<compile_context>
chip_gen: v7x
topology: tpu7x:2x2x1
jax: 0.10.0
libtpu: 0.0.40
codegen_flags: <defaults>
</compile_context>

<pallas_src>
import functools

import jax
import jax.numpy as jnp
from jax import lax
from jax.experimental import pallas as pl
from jax.experimental.pallas import tpu as pltpu


def cosine_sim_loss_kernel(x0_ref, x1_ref, w_ref, lbl_ref, out_ref, *, tb, batch):
    # Fused encoder: one (2*TB, F) @ (F, D) MXU pass, bf16 in, f32 accumulate.
    x01 = jnp.concatenate([x0_ref[...], x1_ref[...]], axis=0)            # (2*TB, F) bf16
    e = jnp.dot(x01, w_ref[...], preferred_element_type=jnp.float32)     # (2*TB, D) f32
    e0 = e[:tb, :]
    e1 = e[tb:, :]

    # torch.cosine_similarity(e0, e1, dim=1, eps=1e-8):
    #   1 / max(||e||, eps) == rsqrt(max(||e||^2, eps^2))  -> EUP, no sqrt/divide on VALU.
    dot = jnp.sum(e0 * e1, axis=-1, keepdims=True)                       # (TB, 1)
    ss0 = jnp.sum(e0 * e0, axis=-1, keepdims=True)                       # (TB, 1)
    ss1 = jnp.sum(e1 * e1, axis=-1, keepdims=True)                       # (TB, 1)
    eps2 = jnp.float32(1e-16)                                            # (1e-8)^2
    cos = dot * lax.rsqrt(jnp.maximum(ss0, eps2)) * lax.rsqrt(jnp.maximum(ss1, eps2))

    # Squared error, masking any zero-padded rows so the wrapper mean uses the true B.
    diff = cos - lbl_ref[...]                                            # (TB, 1)
    row = pl.program_id(0) * tb + lax.broadcasted_iota(jnp.int32, (tb, 1), 0)
    sq = jnp.where(row < batch, diff * diff, jnp.float32(0.0))
    partial = jnp.sum(sq)                                                # scalar f32

    # Lane-dense partial-sum tile; each grid step owns its own (1, 8, 128) block,
    # so the grid axis can be "parallel" (megacore on v7x).
    out_ref[...] = jnp.full((1, 8, 128), partial, dtype=jnp.float32)


def cosine_similarity_loss(x0, x1, w, labels, *, tb=128):
    """x0, x1: (B, F) sentence features; w: (F, D) shared encoder weight; labels: (B,)."""
    B, F = x0.shape
    D = w.shape[1]
    G = pl.cdiv(B, tb)
    Bp = G * tb

    # Pad batch to a multiple of the tile (padded rows are masked in-kernel).
    if Bp != B:
        x0 = jnp.pad(x0, ((0, Bp - B), (0, 0)))
        x1 = jnp.pad(x1, ((0, Bp - B), (0, 0)))
        labels = jnp.pad(labels, (0, Bp - B))

    # bf16 matmul operands (native MXU input, halves HBM traffic); f32 accumulate in-kernel.
    x0b = x0.astype(jnp.bfloat16)
    x1b = x1.astype(jnp.bfloat16)
    wb = w.astype(jnp.bfloat16)
    lbl = labels.astype(jnp.float32).reshape(Bp, 1)

    partials = pl.pallas_call(
        functools.partial(cosine_sim_loss_kernel, tb=tb, batch=B),
        out_shape=jax.ShapeDtypeStruct((G, 8, 128), jnp.float32),
        grid=(G,),
        in_specs=[
            pl.BlockSpec((tb, F), lambda i: (i, 0)),
            pl.BlockSpec((tb, F), lambda i: (i, 0)),
            pl.BlockSpec((F, D), lambda i: (0, 0)),   # weight stays resident across steps
            pl.BlockSpec((tb, 1), lambda i: (i, 0)),
        ],
        out_specs=pl.BlockSpec((1, 8, 128), lambda i: (i, 0, 0)),
        compiler_params=pltpu.CompilerParams(
            dimension_semantics=("parallel",)),
    )(x0b, x1b, wb, lbl)

    # Tiny final reduction (G scalars) done in the wrapper: mean over the true batch.
    return jnp.sum(partials[:, 0, 0]) / B


def _reference_loss(x0, x1, w, labels):
    # Same bf16-matmul / f32-accumulate numerics as the kernel, plain JAX.
    e0 = jnp.dot(x0.astype(jnp.bfloat16), w.astype(jnp.bfloat16),
                 preferred_element_type=jnp.float32)
    e1 = jnp.dot(x1.astype(jnp.bfloat16), w.astype(jnp.bfloat16),
                 preferred_element_type=jnp.float32)
    dot = jnp.sum(e0 * e1, axis=-1)
    n0 = jnp.sqrt(jnp.sum(e0 * e0, axis=-1))
    n1 = jnp.sqrt(jnp.sum(e1 * e1, axis=-1))
    cos = dot / (jnp.maximum(n0, 1e-8) * jnp.maximum(n1, 1e-8))
    return jnp.mean((cos - labels.astype(jnp.float32)) ** 2)


if __name__ == "__main__":
    # Lane-dense dims (multiples of 128) per the perf review; still small enough to run instantly.
    B, F, D = 256, 128, 128   # batch, in_features, hidden
    TB = 128                  # batch tile -> grid of 2 steps

    key = jax.random.PRNGKey(0)
    k0, k1, kw, kl = jax.random.split(key, 4)
    x0 = jax.random.normal(k0, (B, F), dtype=jnp.float32)
    x1 = jax.random.normal(k1, (B, F), dtype=jnp.float32)
    # Deterministic shared encoder weight (stand-in for self.model parameters).
    w = jax.random.normal(kw, (F, D), dtype=jnp.float32) * 0.1
    labels = jax.random.uniform(kl, (B,), dtype=jnp.float32)

    loss = cosine_similarity_loss(x0, x1, w, labels, tb=TB)
    jax.block_until_ready(loss)

    ref = _reference_loss(x0, x1, w, labels)
    assert jnp.allclose(loss, ref, atol=1e-4, rtol=1e-4), (loss, ref)

    print("KERNEL_OK")
</pallas_src>

<mosaic_0001>
module attributes {stable_mosaic.version = 11 : i64} {
  func.func @cosine_sim_loss_kernel(%arg0: i32, %arg1: memref<128x128xbf16, #tpu.memory_space<vmem>>, %arg2: memref<128x128xbf16, #tpu.memory_space<vmem>>, %arg3: memref<128x128xbf16, #tpu.memory_space<vmem>>, %arg4: memref<128x1xf32, #tpu.memory_space<vmem>>, %arg5: memref<1x8x128xf32, #tpu.memory_space<vmem>>) attributes {dimension_semantics = [#tpu.dimension_semantics<parallel>], iteration_bounds = array<i64: 2>, scalar_prefetch = 0 : i64, scratch_operands = 0 : i64, tpu.core_type = #tpu.core_type<tc>, window_params = [{transform_indices = @transform_0, window_bounds = array<i64: 128, 128>}, {transform_indices = @transform_1, window_bounds = array<i64: 128, 128>}, {pipeline_mode = #tpu.pipeline_mode<synchronous>, transform_indices = @transform_2, window_bounds = array<i64: 128, 128>}, {transform_indices = @transform_3, window_bounds = array<i64: 128, 1>}, {transform_indices = @transform_4, window_bounds = array<i64: 1, 8, 128>}]} {
    %c0 = arith.constant 0 : index
    %c0_0 = arith.constant 0 : index
    %0 = vector.load %arg1[%c0, %c0_0] : memref<128x128xbf16, #tpu.memory_space<vmem>>, vector<128x128xbf16>
    %c0_1 = arith.constant 0 : index
    %c0_2 = arith.constant 0 : index
    %1 = vector.load %arg2[%c0_1, %c0_2] : memref<128x128xbf16, #tpu.memory_space<vmem>>, vector<128x128xbf16>
    %2 = tpu.concatenate %0, %1 in 0 : vector<128x128xbf16>, vector<128x128xbf16> -> vector<256x128xbf16>
    %c0_3 = arith.constant 0 : index
    %c0_4 = arith.constant 0 : index
    %3 = vector.load %arg3[%c0_3, %c0_4] : memref<128x128xbf16, #tpu.memory_space<vmem>>, vector<128x128xbf16>
    %cst = arith.constant dense<0.000000e+00> : vector<256x128xf32>
    %4 = tpu.matmul %2, %3, %cst {dimension_numbers = #tpu.dot_dimension_numbers<[1], [0], [0], [1], [0, 0, 1, 1], [], []>} : vector<256x128xbf16>, vector<128x128xbf16>, vector<256x128xf32> -> vector<256x128xf32>
    %5 = vector.extract_strided_slice %4 {offsets = [0, 0], sizes = [128, 128], strides = [1, 1]} : vector<256x128xf32> to vector<128x128xf32>
    %6 = vector.extract_strided_slice %4 {offsets = [128, 0], sizes = [128, 128], strides = [1, 1]} : vector<256x128xf32> to vector<128x128xf32>
    %7 = arith.mulf %5, %6 : vector<128x128xf32>
    %cst_5 = arith.constant dense<0.000000e+00> : vector<128xf32>
    %8 = vector.multi_reduction <add>, %7, %cst_5 [1] : vector<128x128xf32> to vector<128xf32>
    %9 = vector.shape_cast %8 : vector<128xf32> to vector<128x1xf32>
    %10 = arith.mulf %5, %5 : vector<128x128xf32>
    %cst_6 = arith.constant dense<0.000000e+00> : vector<128xf32>
    %11 = vector.multi_reduction <add>, %10, %cst_6 [1] : vector<128x128xf32> to vector<128xf32>
    %12 = vector.shape_cast %11 : vector<128xf32> to vector<128x1xf32>
    %13 = arith.mulf %6, %6 : vector<128x128xf32>
    %cst_7 = arith.constant dense<0.000000e+00> : vector<128xf32>
    %14 = vector.multi_reduction <add>, %13, %cst_7 [1] : vector<128x128xf32> to vector<128xf32>
    %15 = vector.shape_cast %14 : vector<128xf32> to vector<128x1xf32>
    %cst_8 = arith.constant 1.000000e-16 : f32
    %16 = vector.broadcast %cst_8 : f32 to vector<128x1xf32>
    %17 = arith.maximumf %12, %16 : vector<128x1xf32>
    %18 = math.rsqrt %17 : vector<128x1xf32>
    %19 = arith.mulf %9, %18 : vector<128x1xf32>
    %cst_9 = arith.constant 1.000000e-16 : f32
    %20 = vector.broadcast %cst_9 : f32 to vector<128x1xf32>
    %21 = arith.maximumf %15, %20 : vector<128x1xf32>
    %22 = math.rsqrt %21 : vector<128x1xf32>
    %23 = arith.mulf %19, %22 : vector<128x1xf32>
    %c0_10 = arith.constant 0 : index
    %c0_11 = arith.constant 0 : index
    %24 = vector.load %arg4[%c0_10, %c0_11] : memref<128x1xf32, #tpu.memory_space<vmem>>, vector<128x1xf32>
    %25 = arith.subf %23, %24 : vector<128x1xf32>
    %c128_i32 = arith.constant 128 : i32
    %26 = arith.muli %arg0, %c128_i32 : i32
    %27 = tpu.iota {dimensions = array<i32: 0>} : vector<128x1xi32>
    %28 = vector.broadcast %26 : i32 to vector<128x1xi32>
    %29 = arith.addi %28, %27 : vector<128x1xi32>
    %c256_i32 = arith.constant 256 : i32
    %30 = vector.broadcast %c256_i32 : i32 to vector<128x1xi32>
    %31 = arith.cmpi slt, %29, %30 : vector<128x1xi32>
    %32 = arith.mulf %25, %25 : vector<128x1xf32>
    %cst_12 = arith.constant 0.000000e+00 : f32
    %33 = vector.broadcast %cst_12 : f32 to vector<128x1xf32>
    %34 = arith.select %31, %32, %33 : vector<128x1xi1>, vector<128x1xf32>
    %35 = vector.shape_cast %34 : vector<128x1xf32> to vector<1x128x1xf32>
    %cst_13 = arith.constant dense<0.000000e+00> : vector<1xf32>
    %36 = vector.multi_reduction <add>, %35, %cst_13 [1, 2] : vector<1x128x1xf32> to vector<1xf32>
    %37 = vector.shape_cast %36 : vector<1xf32> to vector<1x1x1xf32>
    %38 = vector.extract %37[0, 0, 0] : f32 from vector<1x1x1xf32>
    %39 = vector.broadcast %38 : f32 to vector<1x8x128xf32>
    %c0_14 = arith.constant 0 : index
    %c0_15 = arith.constant 0 : index
    %c0_16 = arith.constant 0 : index
    %40 = vector.load %arg5[%c0_14, %c0_15, %c0_16] : memref<1x8x128xf32, #tpu.memory_space<vmem>>, vector<1x8x128xf32>
    tpu.vector_store %arg5[%c0_14, %c0_15, %c0_16], %39 {strides = array<i32>} : memref<1x8x128xf32, #tpu.memory_space<vmem>>, vector<1x8x128xf32>,
    return
  }
  func.func @transform_0(%arg0: i32) -> (i32, i32) {
    %c0_i32 = arith.constant 0 : i32
    %c0_i32_0 = arith.constant 0 : i32
    return %arg0, %c0_i32 : i32, i32
  }
  func.func @transform_1(%arg0: i32) -> (i32, i32) {
    %c0_i32 = arith.constant 0 : i32
    %c0_i32_0 = arith.constant 0 : i32
    return %arg0, %c0_i32 : i32, i32
  }
  func.func @transform_2(%arg0: i32) -> (i32, i32) {
    %c0_i32 = arith.constant 0 : i32
    %c0_i32_0 = arith.constant 0 : i32
    %c0_i32_1 = arith.constant 0 : i32
    return %c0_i32, %c0_i32_0 : i32, i32
  }
  func.func @transform_3(%arg0: i32) -> (i32, i32) {
    %c0_i32 = arith.constant 0 : i32
    %c0_i32_0 = arith.constant 0 : i32
    return %arg0, %c0_i32 : i32, i32
  }
  func.func @transform_4(%arg0: i32) -> (i32, i32, i32) {
    %c0_i32 = arith.constant 0 : i32
    %c0_i32_0 = arith.constant 0 : i32
    %c0_i32_1 = arith.constant 0 : i32
    return %arg0, %c0_i32, %c0_i32_0 : i32, i32, i32
  }
}

</mosaic_0001>

<bundles_post_ra>
// kernel: tpu_custom_call.1
= control target key start
LH: loop header
LB: loop body
LE: loop exit
PB: predicated region body
PF: predicated region fallthrough
CT: control target
= control target key end

     0   :  { %9 = vsyncpa [#allocation3], 0  ;;  %s1834_s0 = inlined_call_operand.vmem [shape: bf16[256,128], index: 0, kind: input, shape index: {}]   ;;  %s1835_s1 = inlined_call_operand.vmem [shape: bf16[256,128], index: 1, kind: input, shape index: {}]   ;;  %s1836_s2 = inlined_call_operand.hbm [shape: bf16[128,128], index: 2, kind: input, shape index: {}]   ;;  %s1837_s3 = inlined_call_operand.vmem [shape: f32[256,1], index: 3, kind: input, shape index: {}]   ;;  %s1838_s4 = inlined_call_operand.hbm [shape: f32[2,8,128], index: 4, kind: output, shape index: {}]  }
   0x1   :  { %10 = vsyncpa [#allocation4], 0 }
   0x2   :  { %12 = vsyncpa [#allocation4 + $0x1], 0  ;;  %s1515_s15 = smov 0   ;;  %s1517_s16 = smov 0  }
   0x3   :  { %s1519_s17 = smov 0   ;;  %s1521_s18 = smov 0  }
   0x4 LB: > { %s1536_s19 = sadd.s32 4294967295, %s1484_s18   ;;  %s1118_s20 = sadd.s32 4294967294, %s1484_s18   ;;  %s1484_s18 = sphi %s1521_s18, %s1854_s18   ;;  %s1480_s17 = sphi %s1519_s17, %s1853_s17   ;;  %s1476_s16 = sphi %s1517_s16, %s1852_s16   ;;  %s1472_s15 = sphi %s1515_s15, %s1851_s15  }
   0x5   : > { %s1540_s21 = sadd.s32 1, %s1484_s18   ;;  %s124_s22 = sadd.s32 1, %s1480_s17 }
   0x6   : > { %s121_s23 = ssub.s32 %s1484_s18, %s1540_s21  ;;  %p134_p0 = scmp.ne.s32.totalorder %s1480_s17, %s1476_s16 }
   0x7   : > { %p122_p1 = scmp.eq.s32.totalorder %s121_s23, 0  ;;  %p135_p2 = scmp.eq.s32.totalorder %s1536_s19, 1 }
   0x8   : > { %p140_p3 = scmp.ne.s32.totalorder %s1476_s16, %s1472_s15  ;;  %p141_p4 = scmp.eq.s32.totalorder %s1118_s20, 1 }
   0x9   : > { %s1551_s24 = scalar_select %p122_p1, %s1480_s17, %s124_s22  }
   0xa   : > { %p1553_p5 = por %p135_p2, %p134_p0  ;;  %p1557_p6 = por %p141_p4, %p140_p3 }
   0xb   : > { %p1119_p7 = scmp.ge.s32.totalorder %s1484_s18, 1  ;;  %p148_p8 = scmp.lt.s32.totalorder %s1484_s18, 3 }
   0xc   : > { %s1842_s25 = scalar_select %p1553_p5, 1, 0 }
   0xd   : > { %s1843_s26 = scalar_select %p1557_p6, 1, 0 }
   0xe   : > { %p1839_p9 = scmp.eq.s32.totalorder %s1536_s19, 0  ;;  %p1564_p10 = pnand %p1119_p7, %p148_p8 }
   0xf   : > { %s1486_s28 = smov [#allocation2]   ;;  %s1390_s7 = scalar_lea.hbm %s1836_s2, 1024 }
  0x10   : > { %s1844_s27 = scalar_select %p1564_p10, 1, 0 }
  0x11   : > { %s160_s29 = sshll.u32 %s1486_s28, 4  ;;  %p1256_p11 = pneg %p1564_p10  ;;  %s161_s29 = int_to_ptr.vmem [resolvable:$true] %s160_s29 }
  0x12   : > { %p1391_p13 = scmp.ne.s32.totalorder %s1836_s2, %s1390_s7  ;;  %p1397_p3 = scmp.lt.u32.totalorder %s1390_s7, %s1836_s2 }
  0x13   : > { %p1572_p12 = pnand %p1839_p9, %p1256_p11 }
  0x15   : > { %p1392_p0 = pneg %p1572_p12 }
  0x17   : > { %p1393_p1 = pnand %p1392_p0, %p1391_p13 }
  0x19   : > { %p1394_p2 = pneg %p1393_p1 }
  0x1b   : > { %p1399_p4 = pnand %p1397_p3, %p1394_p2 }
  0x1d   : > { %1402 = shalt.err (!%p1399_p4)
}
  0x1e   : > { %s1403_s12 = scalar_lea.vmem %s161_s29, 1024  ;;  %p1411_p9 = scmp.lt.s32.totalorder %s161_s29, %s161_s29 }
  0x1f   : > { %p1404_p7 = scmp.ne.s32.totalorder %s161_s29, %s1403_s12  ;;  %p1412_p6 = scmp.lt.s32.totalorder %s1403_s12, %s1403_s12 }
  0x21   : > { %p1406_p8 = pnand %p1404_p7, %p1392_p0  ;;  %p1413_p5 = por %p1412_p6, %p1411_p9 }
  0x23   : > { %p1407_p11 = pneg %p1406_p8 }
  0x25   : > { %p1414_p10 = pnand %p1413_p5, %p1407_p11 }
  0x27   : > { %1417 = shalt.err (!%p1414_p10)
}
  0x28   : > { %s1487_s13 = smov 64   ;;  %s1488_s14 = smov 4  }
  0x29   : > { %1259 = dma.hbm_to_vmem [thread:$0]  (!%p1572_p12), %s1836_s2, 1024, %s161_s29, [#allocation3], %s1487_s13, %s1487_s13, %s1488_s14  }
  0x2a   : > { %p1846_p13 = scmp.ne.s32.totalorder %s1844_s27, 0 }
  0x2b   : > { %p1847_p1 = scmp.eq.s32.totalorder (!%p1846_p13), %s1536_s19, 0 }
  0x2c   : > { %203 = sbr.rel (%p1846_p13) target bundleno = 766 (0x2fe), region = 36 }
  0x33   : > { %1463 = dma.done.wait (%p1847_p1), [#allocation3], 1024   ;;  %p1848_p0 = pmov %p1847_p1 }
  0x34   : > { %s1125_s23 = sshll.u32 %s1536_s19, 4  ;;  %v1302_v0 = vld [vmem:[#allocation2] sm:$0xff]   ;;  %v1303_v1 = vld [vmem:[#allocation2 + $0x8] sm:$0xff]   ;;  %v1304_v2 = vld [vmem:[#allocation2 + $0x10] sm:$0xff]   ;;  %s1155_s12 = sshll.u32 %s1536_s19, 7  ;;  %vm966_vm3 = vcmask 7168  }
  0x35   : > { %1465 = vsyncadd (%p1848_p0), [#allocation3], 4294966272  ;;  %p240_p5 = scmp.lt.s32.totalorder %s1125_s23, 31  ;;  %1184 = vmatprep.subr.bf16.mxu0 %v1302_v0  ;;  %1232 = vmatprep.subr.bf16.mxu1 %v1302_v0  ;;  %v1305_v3 = vld [vmem:[#allocation2 + $0x18] sm:$0xff]   ;;  %v1306_v6 = vld [vmem:[#allocation2 + $0x20] sm:$0xff]   ;;  %s236_s13 = sand.u32 1, %s1476_s16  }
  0x36   : > { %1185 = vmatpush3.bf16.msra.mxu0 %v1302_v0  ;;  %1240 = vmatpush3.bf16.msra.mxu1 %v1302_v0  ;;  %v1307_v7 = vld [vmem:[#allocation2 + $0x28] sm:$0xff]   ;;  %v1308_v8 = vld [vmem:[#allocation2 + $0x30] sm:$0xff]   ;;  %v1309_v9 = vld [vmem:[#allocation2 + $0x38] sm:$0xff]   ;;  %s1124_s14 = sshll.u32 %s236_s13, 3  ;;  %s1794_s29 = scalar_lea.hbm %s1838_s4, %s1155_s12 }
  0x37   : > { %s1856_s23 = smov (!%p240_p5, %s1125_s23), 31  ;;  %1186 = vmatprep.subr.bf16.mxu0 %v1303_v1  ;;  %1233 = vmatprep.subr.bf16.mxu1 %v1303_v1  ;;  %s238_s20 = scalar_lea.vmem [#allocation5], %s1124_s14 }
  0x38   : > { %s1126_s28 = sshll.u32 %s1856_s23, 2  ;;  %s1130_s8 = sshll.u32 %s1856_s23, 3 }
  0x39   : > { %s1605_s30 = scalar_lea.vmem %s1834_s0, %s1126_s28  ;;  %s1610_s7 = scalar_lea.vmem %s1835_s1, %s1126_s28 }
  0x3a   : > { %1187 = vmatpush3.bf16.msra.mxu0 %v1303_v1  ;;  %1241 = vmatpush3.bf16.msra.mxu1 %v1303_v1  ;;  %v1310_v4 = vld [vmem:[%s1605_s30] sm:$0xff]   ;;  %v1312_v10 = vld [vmem:[%s1605_s30 + $0x8] sm:$0xff]   ;;  %v1314_v12 = vld [vmem:[%s1605_s30 + $0x10] sm:$0xff]   ;;  %s1662_s11 = scalar_lea.vmem %s1837_s3, %s1130_s8  ;;  %s1023_s22 = sshll.u32 %s238_s20, 4  ;;  %s1787_s22 = int_to_ptr.vmem [resolvable:$true] %s1023_s22 }
  0x3b   : > { %1188 = vmatprep.subr.bf16.mxu0 %v1304_v2  ;;  %1234 = vmatprep.subr.bf16.mxu1 %v1304_v2  ;;  %v1311_v5 = vld [vmem:[%s1610_s7] sm:$0xff]   ;;  %v1313_v11 = vld [vmem:[%s1610_s7 + $0x8] sm:$0xff]   ;;  %v1315_v13 = vld [vmem:[%s1610_s7 + $0x10] sm:$0xff]   ;;  %s1418_s5 = scalar_lea.vmem %s1787_s22, 128  ;;  %p1849_p9 = scmp.ne.s32.totalorder %s1842_s25, 0 }
  0x3c   : > { %1200 = vmatprep.mubr.bf16.mxu0 %v1310_v4  ;;  %1216 = vmatprep.mubr.bf16.mxu1 %v1311_v5  ;;  %v1316_v14 = vld [vmem:[%s1605_s30 + $0x18] sm:$0xff]   ;;  %v1318_v16 = vld [vmem:[%s1605_s30 + $0x20] sm:$0xff]   ;;  %v1320_v18 = vld [vmem:[%s1605_s30 + $0x28] sm:$0xff]   ;;  %p1419_p6 = scmp.ne.s32.totalorder %s1787_s22, %s1418_s5  ;;  %s1489_s6 = smov [#allocation5]  }
  0x3d   : > { %v1317_v15 = vld [vmem:[%s1610_s7 + $0x18] sm:$0xff]   ;;  %v1319_v17 = vld [vmem:[%s1610_s7 + $0x20] sm:$0xff]   ;;  %v1321_v19 = vld [vmem:[%s1610_s7 + $0x28] sm:$0xff]  }
  0x3e   : > { %1189 = vmatpush3.bf16.msra.mxu0 %v1304_v2  ;;  %1242 = vmatpush3.bf16.msra.mxu1 %v1304_v2  ;;  %v1322_v20 = vld [vmem:[%s1605_s30 + $0x30] sm:$0xff]   ;;  %v1324_v22 = vld [vmem:[%s1605_s30 + $0x38] sm:$0xff]   ;;  %s1010_s30 = scalar_lea.sflag [#allocation4], %s236_s13  ;;  %p1420_p10 = pnand %p1419_p6, %p1849_p9 }
  0x3f   : > { %1190 = vmatprep.subr.bf16.mxu0 %v1305_v3  ;;  %1235 = vmatprep.subr.bf16.mxu1 %v1305_v3  ;;  %v1323_v21 = vld [vmem:[%s1610_s7 + $0x30] sm:$0xff]   ;;  %v1325_v23 = vld [vmem:[%s1610_s7 + $0x38] sm:$0xff]   ;;  %s1422_s7 = sshll.u32 %s1489_s6, 4  ;;  %s1423_s7 = int_to_ptr.vmem [resolvable:$false] %s1422_s7 }
  0x40   : > { %p1421_p12 = pneg %p1420_p10  ;;  %s1424_s8 = scalar_lea.vmem %s1423_s7, 256 }
  0x41   : > { %p1425_p2 = scmp.lt.s32.totalorder %s1787_s22, %s1423_s7  ;;  %p1426_p3 = scmp.lt.s32.totalorder %s1424_s8, %s1418_s5 }
  0x42   : > { %1191 = vmatpush3.bf16.msra.mxu0 %v1305_v3  ;;  %1243 = vmatpush3.bf16.msra.mxu1 %v1305_v3 }
  0x43   : > { %1192 = vmatprep.subr.bf16.mxu0 %v1306_v6  ;;  %1236 = vmatprep.subr.bf16.mxu1 %v1306_v6  ;;  %p1427_p4 = por %p1426_p3, %p1425_p2 }
  0x45   : > { %p1428_p7 = pnand %p1427_p4, %p1421_p12 }
  0x46   : > { %1193 = vmatpush3.bf16.msra.mxu0 %v1306_v6  ;;  %1244 = vmatpush3.bf16.msra.mxu1 %v1306_v6 }
  0x47   : > { %1194 = vmatprep.subr.bf16.mxu0 %v1307_v7  ;;  %1237 = vmatprep.subr.bf16.mxu1 %v1307_v7 }
  0x4a   : > { %1195 = vmatpush3.bf16.msra.mxu0 %v1307_v7  ;;  %1245 = vmatpush3.bf16.msra.mxu1 %v1307_v7 }
  0x4b   : > { %1196 = vmatprep.subr.bf16.mxu0 %v1308_v8  ;;  %1238 = vmatprep.subr.bf16.mxu1 %v1308_v8 }
  0x4e   : > { %1197 = vmatpush3.bf16.msra.mxu0 %v1308_v8  ;;  %1246 = vmatpush3.bf16.msra.mxu1 %v1308_v8 }
  0x4f   : > { %1198 = vmatprep.subr.bf16.mxu0 %v1309_v9  ;;  %1239 = vmatprep.subr.bf16.mxu1 %v1309_v9 }
  0x52   : > { %1199 = vmatpush3.bf16.msra.mxu0 %v1309_v9  ;;  %1247 = vmatpush3.bf16.msra.mxu1 %v1309_v9 }
  0x55   : > { %1201 = vmatmul.mubr.bf16.vlgmr.msra.gmra.mrb[0].mxu0 %v1312_v10  ;;  %1217 = vmatmul.mubr.bf16.vlgmr.msra.gmra.mrb[0].mxu1 %v1313_v11 }
  0x56   : > { %1204 = vmatprep.mubr.bf16.mxu0 %v1314_v12  ;;  %1220 = vmatprep.mubr.bf16.mxu1 %v1315_v13 }
  0x5d   : > { %1205 = vmatmul.mubr.bf16.gmra.mrb[4].mxu0 %v1316_v14  ;;  %1221 = vmatmul.mubr.bf16.gmra.mrb[4].mxu1 %v1317_v15 }
  0x5e   : > { %1208 = vmatprep.mubr.bf16.mxu0 %v1318_v16  ;;  %1224 = vmatprep.mubr.bf16.mxu1 %v1319_v17 }
  0x65   : > { %1209 = vmatmul.mubr.bf16.gmra.mrb[8].mxu0 %v1320_v18  ;;  %1225 = vmatmul.mubr.bf16.gmra.mrb[8].mxu1 %v1321_v19 }
  0x66   : > { %1212 = vmatprep.mubr.bf16.mxu0 %v1322_v20  ;;  %1228 = vmatprep.mubr.bf16.mxu1 %v1323_v21 }
  0x6d   : > { %1213 = vmatmul.mubr.bf16.gmra.mrb[12].mxu0 %v1324_v22  ;;  %1229 = vmatmul.mubr.bf16.gmra.mrb[12].mxu1 %v1325_v23 }
 0x128   : > { %v1202_v24 = vpop.f32.mrb[0].mxu0  ;;  %v1218_v25 = vpop.f32.mrb[0].mxu1 }
 0x129   : > { %v484_v26 = vpop.f32.mrb[1].mxu0  ;;  %v548_v27 = vpop.f32.mrb[1].mxu1  ;;  %v709_v28 = vmul.f32 %v1218_v25, %v1218_v25  ;;  %v661_v29 = vmul.f32 %v1202_v24, %v1202_v24  ;;  %v613_v30 = vmul.f32 %v1218_v25, %v1202_v24 }
 0x12a   : > { %v1203_v31 = vpop.f32.mrb[2].mxu0  ;;  %v1219_v32 = vpop.f32.mrb[2].mxu1  ;;  %v611_v33 = vmul.f32 %v548_v27, %v484_v26  ;;  %v659_v38 = vmul.f32 %v484_v26, %v484_v26  ;;  %v707_v41 = vmul.f32 %v548_v27, %v548_v27 }
 0x12b   : > { %727 = vadd.xlane.f32.xlu0 %v709_v28  ;;  %v551_v34 = vpop.f32.mrb[3].mxu1  ;;  %679 = vadd.xlane.f32.xlu1 %v661_v29  ;;  %v487_v35 = vpop.f32.mrb[3].mxu0  ;;  %v614_v36 = vmul.f32 %v1219_v32, %v1203_v31  ;;  %v710_v42 = vmul.f32 %v1219_v32, %v1219_v32  ;;  %v662_v55 = vmul.f32 %v1203_v31, %v1203_v31 }
 0x12c   : > { %v612_v37 = vmul.f32 %v551_v34, %v487_v35  ;;  %v660_v56 = vmul.f32 %v487_v35, %v487_v35  ;;  %v708_v4 = vmul.f32 %v551_v34, %v551_v34 }
 0x12f   : > { %631 = vadd.xlane.f32.xlu1 %v613_v30  ;;  %675 = vadd.xlane.f32.xlu0 %v659_v38 }
 0x130   : > { %v1222_v39 = vpop.f32.mrb[4].mxu1  ;;  %v1206_v40 = vpop.f32.mrb[4].mxu0 }
 0x131   : > { %v500_v43 = vpop.f32.mrb[5].mxu0  ;;  %v564_v44 = vpop.f32.mrb[5].mxu1  ;;  %v617_v45 = vmul.f32 %v1222_v39, %v1206_v40  ;;  %v665_v63 = vmul.f32 %v1206_v40, %v1206_v40  ;;  %v713_v17 = vmul.f32 %v1222_v39, %v1222_v39 }
 0x132   : > { %v1207_v46 = vpop.f32.mrb[6].mxu0  ;;  %v1223_v47 = vpop.f32.mrb[6].mxu1  ;;  %v615_v48 = vmul.f32 %v564_v44, %v500_v43  ;;  %v663_v18 = vmul.f32 %v500_v43, %v500_v43  ;;  %v711_v19 = vmul.f32 %v564_v44, %v564_v44 }
 0x133   : > { %723 = vadd.xlane.f32.xlu1 %v707_v41  ;;  %729 = vadd.xlane.f32.xlu0 %v710_v42  ;;  %v503_v49 = vpop.f32.mrb[7].mxu0  ;;  %v567_v50 = vpop.f32.mrb[7].mxu1  ;;  %v618_v51 = vmul.f32 %v1223_v47, %v1207_v46  ;;  %v714_v20 = vmul.f32 %v1223_v47, %v1223_v47  ;;  %v666_v21 = vmul.f32 %v1207_v46, %v1207_v46 }
 0x134   : > { %v616_v52 = vmul.f32 %v567_v50, %v503_v49  ;;  %v664_v22 = vmul.f32 %v503_v49, %v503_v49  ;;  %v712_v24 = vmul.f32 %v567_v50, %v567_v50 }
 0x137   : > { %627 = vadd.xlane.f32.xlu1 %v611_v33  ;;  %633 = vadd.xlane.f32.xlu0 %v614_v36 }
 0x138   : > { %v1226_v53 = vpop.f32.mrb[8].mxu1  ;;  %v1210_v54 = vpop.f32.mrb[8].mxu0 }
 0x139   : > { %v516_v57 = vpop.f32.mrb[9].mxu0  ;;  %v580_v58 = vpop.f32.mrb[9].mxu1  ;;  %v1628_v59 = vmul.f32 %v1226_v53, %v1210_v54  ;;  %v669_v23 = vmul.f32 %v1210_v54, %v1210_v54  ;;  %v717_v25 = vmul.f32 %v1226_v53, %v1226_v53 }
 0x13a   : > { %v1211_v60 = vpop.f32.mrb[10].mxu0  ;;  %v1227_v61 = vpop.f32.mrb[10].mxu1  ;;  %v619_v62 = vmul.f32 %v580_v58, %v516_v57  ;;  %v667_v26 = vmul.f32 %v516_v57, %v516_v57  ;;  %v715_v28 = vmul.f32 %v580_v58, %v580_v58 }
 0x13b   : > { %681 = vadd.xlane.f32.xlu1 %v662_v55  ;;  %677 = vadd.xlane.f32.xlu0 %v660_v56  ;;  %v519_v0 = vpop.f32.mrb[11].mxu0  ;;  %v583_v1 = vpop.f32.mrb[11].mxu1  ;;  %v1630_v2 = vmul.f32 %v1227_v61, %v1211_v60  ;;  %v670_v27 = vmul.f32 %v1211_v60, %v1211_v60  ;;  %v718_v29 = vmul.f32 %v1227_v61, %v1227_v61 }
 0x13c   : > { %v1632_v3 = vmul.f32 %v583_v1, %v519_v0  ;;  %v668_v30 = vmul.f32 %v519_v0, %v519_v0  ;;  %v716_v32 = vmul.f32 %v583_v1, %v583_v1 }
 0x13f   : > { %725 = vadd.xlane.f32.xlu0 %v708_v4  ;;  %687 = vadd.xlane.f32.xlu1 %v665_v63 }
 0x140   : > { %v1230_v5 = vpop.f32.mrb[12].mxu1  ;;  %v1214_v6 = vpop.f32.mrb[12].mxu0 }
 0x141   : > { %v532_v7 = vpop.f32.mrb[13].mxu0  ;;  %v596_v8 = vpop.f32.mrb[13].mxu1  ;;  %v1634_v9 = vmul.f32 %v1230_v5, %v1214_v6  ;;  %v673_v31 = vmul.f32 %v1214_v6, %v1214_v6  ;;  %v721_v38 = vmul.f32 %v1230_v5, %v1230_v5 }
 0x142   : > { %v1215_v10 = vpop.f32.mrb[14].mxu0  ;;  %v1231_v11 = vpop.f32.mrb[14].mxu1  ;;  %v623_v12 = vmul.f32 %v596_v8, %v532_v7  ;;  %v671_v33 = vmul.f32 %v532_v7, %v532_v7  ;;  %v719_v35 = vmul.f32 %v596_v8, %v596_v8 }
 0x143   : > { %629 = vadd.xlane.f32.xlu0 %v612_v37  ;;  %639 = vadd.xlane.f32.xlu1 %v617_v45  ;;  %v535_v13 = vpop.f32.mrb[15].mxu0  ;;  %v599_v14 = vpop.f32.mrb[15].mxu1  ;;  %v626_v15 = vmul.f32 %v1231_v11, %v1215_v10  ;;  %v674_v34 = vmul.f32 %v1215_v10, %v1215_v10  ;;  %v722_v39 = vmul.f32 %v1231_v11, %v1231_v11  ;;  %v884_v10 = vlaneseq }
 0x144   : > { %v624_v16 = vmul.f32 %v599_v14, %v535_v13  ;;  %v672_v36 = vmul.f32 %v535_v13, %v535_v13  ;;  %v720_v37 = vmul.f32 %v599_v14, %v599_v14 }
 0x147   : > { %735 = vadd.xlane.f32.xlu0 %v713_v17  ;;  %683 = vadd.xlane.f32.xlu1 %v663_v18 }
 0x14b   : > { %731 = vadd.xlane.f32.xlu0 %v711_v19  ;;  %635 = vadd.xlane.f32.xlu1 %v615_v48 }
 0x14f   : > { %737 = vadd.xlane.f32.xlu0 %v714_v20  ;;  %689 = vadd.xlane.f32.xlu1 %v666_v21  ;;  %v1655_v20 = vshrl.u32 %v884_v10, 7 }
 0x153   : > { %641 = vadd.xlane.f32.xlu0 %v618_v51  ;;  %685 = vadd.xlane.f32.xlu1 %v664_v22 }
 0x157   : > { %733 = vadd.xlane.f32.xlu0 %v712_v24  ;;  %695 = vadd.xlane.f32.xlu1 %v669_v23 }
 0x15b   : > { %637 = vadd.xlane.f32.xlu0 %v616_v52  ;;  %743 = vadd.xlane.f32.xlu1 %v717_v25 }
 0x15f   : > { %691 = vadd.xlane.f32.xlu1 %v667_v26  ;;  %697 = vadd.xlane.f32.xlu0 %v670_v27 }
 0x163   : > { %739 = vadd.xlane.f32.xlu1 %v715_v28  ;;  %745 = vadd.xlane.f32.xlu0 %v718_v29  ;;  %v852_v28 = vld [vmem:[%s1662_s11 + $0x8] sm:$0xff]  ;;  %v886_v29 = vadd.s32 8, %v1655_v20 }
 0x167   : > { %643 = vadd.xlane.f32.xlu1 %v619_v62  ;;  %693 = vadd.xlane.f32.xlu0 %v668_v30 }
 0x16b   : > { %741 = vadd.xlane.f32.xlu0 %v716_v32  ;;  %703 = vadd.xlane.f32.xlu1 %v673_v31  ;;  %v887_v32 = vadd.s32 16, %v1655_v20 }
 0x16f   : > { %699 = vadd.xlane.f32.xlu1 %v671_v33  ;;  %705 = vadd.xlane.f32.xlu0 %v674_v34  ;;  %v851_v33 = vld [vmem:[%s1662_s11] sm:$0xff] }
 0x173   : > { %747 = vadd.xlane.f32.xlu1 %v719_v35  ;;  %701 = vadd.xlane.f32.xlu0 %v672_v36 }
 0x177   : > { %751 = vadd.xlane.f32.xlu1 %v721_v38  ;;  %749 = vadd.xlane.f32.xlu0 %v720_v37  ;;  %v1674_v37 = vstv %s1155_s12 }
 0x17b   : > { %753 = vadd.xlane.f32.xlu1 %v722_v39  ;;  %645 = vadd.xlane.f32.xlu0 %v1632_v3 }
 0x17f   : > { %649 = vadd.xlane.f32.xlu1 %v1630_v2  ;;  %647 = vadd.xlane.f32.xlu0 %v1628_v59 }
 0x183   : > { %651 = vadd.xlane.f32.xlu0 %v623_v12  ;;  %653 = vadd.xlane.f32.xlu1 %v624_v16 }
 0x187   : > { %655 = vadd.xlane.f32.xlu0 %v1634_v9  ;;  %657 = vadd.xlane.f32.xlu1 %v626_v15 }
 0x1b8   : > { %v728_v40 = vpop.xlane.xlu0 %727  ;;  %v680_v41 = vpop.xlane.xlu1 %679 }
 0x1b9   : > { %v757_v61 = vmax.f32 %v680_v41, 1e-16  ;;  %v805_v2 = vmax.f32 %v728_v40, 1e-16 }
 0x1bc   : > { %v1640_v42 = vpop.xlane.xlu1 %631  ;;  %v676_v43 = vpop.xlane.xlu0 %675 }
 0x1bd   : > { %v755_v57 = vmax.f32 %v676_v43, 1e-16  ;;  %v902_v43 = vadd.s32 %v1674_v37, %v1655_v20 }
 0x1bf   : > { %vm918_vm0 = vcmp.lt.s32.totalorder %v902_v43, 256 }
 0x1c0   : > { %v724_v44 = vpop.xlane.xlu1 %723  ;;  %v730_v45 = vpop.xlane.xlu0 %729 }
 0x1c1   : > { %v803_v62 = vmax.f32 %v724_v44, 1e-16  ;;  %v806_v3 = vmax.f32 %v730_v45, 1e-16  ;;  %v903_v44 = vadd.s32 %v1674_v37, %v886_v29 }
 0x1c3   : > { %vm919_vm1 = vcmp.lt.s32.totalorder %v903_v44, 256 }
 0x1c4   : > { %v628_v46 = vpop.xlane.xlu1 %627  ;;  %v1642_v47 = vpop.xlane.xlu0 %633 }
 0x1c8   : > { %v682_v48 = vpop.xlane.xlu1 %681  ;;  %v678_v49 = vpop.xlane.xlu0 %677 }
 0x1c9   : > { %v756_v56 = vmax.f32 %v678_v49, 1e-16  ;;  %v758_v63 = vmax.f32 %v682_v48, 1e-16 }
 0x1cb   : > { %1326 = vrsqrt.f32 %v756_v56 }
 0x1cc   : > { %v726_v50 = vpop.xlane.xlu0 %725  ;;  %v688_v51 = vpop.xlane.xlu1 %687  ;;  %1328 = vrsqrt.f32 %v755_v57 }
 0x1cd   : > { %v804_v58 = vmax.f32 %v726_v50, 1e-16  ;;  %v761_v16 = vmax.f32 %v688_v51, 1e-16  ;;  %v904_v50 = vadd.s32 %v1674_v37, %v887_v32  ;;  %v888_v51 = vadd.s32 24, %v1655_v20 }
 0x1cf   : > { %1330 = vrsqrt.f32 %v804_v58  ;;  %vm920_vm2 = vcmp.lt.s32.totalorder %v904_v50, 256 }
 0x1d0   : > { %v630_v52 = vpop.xlane.xlu0 %629  ;;  %v1644_v53 = vpop.xlane.xlu1 %639  ;;  %1332 = vrsqrt.f32 %v757_v61  ;;  %v854_v61 = vld [vmem:[%s1662_s11 + $0x18] sm:$0xff] }
 0x1d1   : > { %1334 = vrsqrt.f32 %v803_v62 }
 0x1d2   : > { %1336 = vrsqrt.f32 %v758_v63 }
 0x1d3   : > { %1338 = vrsqrt.f32 %v805_v2  ;;  %v889_v2 = vadd.s32 32, %v1655_v20 }
 0x1d4   : > { %v736_v54 = vpop.xlane.xlu0 %735  ;;  %v684_v55 = vpop.xlane.xlu1 %683  ;;  %1340 = vrsqrt.f32 %v806_v3 }
 0x1d5   : > { %v759_v6 = vmax.f32 %v684_v55, 1e-16  ;;  %v1327_v9 = vpop.eup %1326  ;;  %v809_v21 = vmax.f32 %v736_v54, 1e-16 }
 0x1d6   : > { %v1329_v13 = vpop.eup %1328  ;;  %v788_v18 = vmul.f32 %v1327_v9, %v630_v52 }
 0x1d7   : > { %1342 = vrsqrt.f32 %v759_v6  ;;  %v787_v24 = vmul.f32 %v1329_v13, %v628_v46  ;;  %v853_v46 = vld [vmem:[%s1662_s11 + $0x10] sm:$0xff]  ;;  %v890_v6 = vadd.s32 40, %v1655_v20 }
 0x1d8   : > { %v732_v59 = vpop.xlane.xlu0 %731  ;;  %v1646_v60 = vpop.xlane.xlu1 %635 }
 0x1d9   : > { %v807_v7 = vmax.f32 %v732_v59, 1e-16  ;;  %v1331_v15 = vpop.eup %1330 }
 0x1da   : > { %v1333_v17 = vpop.eup %1332  ;;  %v836_v25 = vmul.f32 %v1331_v15, %v788_v18 }
 0x1db   : > { %1344 = vrsqrt.f32 %v807_v7  ;;  %v1335_v19 = vpop.eup %1334  ;;  %v789_v27 = vmul.f32 %v1333_v17, %v1640_v42 }
 0x1dc   : > { %v1648_v0 = vpop.xlane.xlu0 %737  ;;  %v690_v1 = vpop.xlane.xlu1 %689  ;;  %v835_v31 = vmul.f32 %v1335_v19, %v787_v24  ;;  %v868_v39 = vsub.f32 %v836_v25, %v852_v28  ;;  %v906_v19 = vadd.s32 %v1674_v37, %v889_v2  ;;  %v907_v28 = vadd.s32 %v1674_v37, %v890_v6 }
 0x1dd   : > { %v1337_v26 = vpop.eup %1336  ;;  %v762_v30 = vmax.f32 %v690_v1, 1e-16 }
 0x1de   : > { %v1339_v36 = vpop.eup %1338  ;;  %v790_v38 = vmul.f32 %v1337_v26, %v1642_v47  ;;  %v867_v48 = vsub.f32 %v835_v31, %v851_v33  ;;  %v810_v47 = vmax.f32 %v1648_v0, 1e-16  ;;  %v935_v57 = vmul.f32 %v868_v39, %v868_v39 }
 0x1df   : > { %v1341_v41 = vpop.eup %1340  ;;  %v837_v42 = vmul.f32 %v1339_v36, %v789_v27  ;;  %v891_v0 = vadd.s32 48, %v1655_v20  ;;  %v892_v27 = vadd.s32 56, %v1655_v20  ;;  %vm922_vm5 = vcmp.lt.s32.totalorder %v906_v19, 256 }
 0x1e0   : > { %v1650_v4 = vpop.xlane.xlu0 %641  ;;  %v686_v5 = vpop.xlane.xlu1 %685  ;;  %v838_v56 = vmul.f32 %v1341_v41, %v790_v38  ;;  %v934_v1 = vmul.f32 %v867_v48, %v867_v48  ;;  %v951_v10 = vsel %vm919_vm1, %v935_v57, 0.0  ;;  %vm923_vm6 = vcmp.lt.s32.totalorder %v907_v28, 256 }
 0x1e1   : > { %v760_v8 = vmax.f32 %v686_v5, 1e-16  ;;  %v1343_v45 = vpop.eup %1342  ;;  %v869_v59 = vsub.f32 %v837_v42, %v853_v46  ;;  %v968_v25 = vsel %vm966_vm3, %v951_v10, 0.0  ;;  %v893_v42 = vadd.s32 64, %v1655_v20 }
 0x1e2   : > { %v791_v62 = vmul.f32 %v1343_v45, %v1646_v60  ;;  %v870_v13 = vsub.f32 %v838_v56, %v854_v61  ;;  %v905_v60 = vadd.s32 %v1674_v37, %v888_v51  ;;  %v950_v17 = vsel %vm918_vm0, %v934_v1, 0.0  ;;  %v858_v1 = vld [vmem:[%s1662_s11 + $0x38] sm:$0xff] }
 0x1e3   : > { %1346 = vrsqrt.f32 %v760_v8  ;;  %v936_v15 = vmul.f32 %v869_v59, %v869_v59  ;;  %v967_v33 = vsel %vm966_vm3, %v950_v17, 0.0  ;;  %v1711_v44 = vadd.s32 %v1674_v37, %v892_v27 }
 0x1e4   : > { %v734_v11 = vpop.xlane.xlu0 %733  ;;  %v1652_v12 = vpop.xlane.xlu1 %695  ;;  %vm921_vm4 = vcmp.lt.s32.totalorder %v905_v60, 256 }
 0x1e5   : > { %v808_v14 = vmax.f32 %v734_v11, 1e-16  ;;  %v1345_v49 = vpop.eup %1344  ;;  %v855_v11 = vld [vmem:[%s1662_s11 + $0x20] sm:$0xff]  ;;  %v952_v32 = vsel %vm920_vm2, %v936_v15, 0.0  ;;  %vm925_vm8 = vcmp.lt.s32.totalorder %v1711_v44, 256 }
 0x1e6   : > { %v839_v5 = vmul.f32 %v1345_v49, %v791_v62  ;;  %v970_v50 = vsel %vm966_vm3, %v952_v32, 0.0  ;;  %v1722_v62 = vadd.s32 %v1674_v37, %v893_v42 }
 0x1e7   : > { %1348 = vrsqrt.f32 %v808_v14 }
 0x1e8   : > { %v638_v22 = vpop.xlane.xlu0 %637  ;;  %v1657_v23 = vpop.xlane.xlu1 %743  ;;  %1350 = vrsqrt.f32 %v761_v16  ;;  %v871_v26 = vsub.f32 %v839_v5, %v855_v11  ;;  %v859_v5 = vld [vmem:[%s1662_s11 + $0x40] sm:$0xff]  ;;  %vm926_vm9 = vcmp.lt.s32.totalorder %v1722_v62, 256 }
 0x1e9   : > { %1352 = vrsqrt.f32 %v809_v21  ;;  %v856_v21 = vld [vmem:[%s1662_s11 + $0x28] sm:$0xff]  ;;  %v813_v61 = vmax.f32 %v1657_v23, 1e-16  ;;  %v894_v23 = vadd.s32 72, %v1655_v20 }
 0x1ea   : > { %1354 = vrsqrt.f32 %v762_v30  ;;  %v938_v43 = vmul.f32 %v871_v26, %v871_v26 }
 0x1ec   : > { %v692_v34 = vpop.xlane.xlu1 %691  ;;  %v1670_v35 = vpop.xlane.xlu0 %697 }
 0x1ed   : > { %v763_v40 = vmax.f32 %v692_v34, 1e-16  ;;  %v1347_v55 = vpop.eup %1346  ;;  %v857_v34 = vld [vmem:[%s1662_s11 + $0x30] sm:$0xff]  ;;  %v766_v56 = vmax.f32 %v1670_v35, 1e-16 }
 0x1ee   : > { %v792_v7 = vmul.f32 %v1347_v55, %v638_v22  ;;  %v1698_v22 = vadd.s32 %v1674_v37, %v891_v0 }
 0x1ef   : > { %1356 = vrsqrt.f32 %v763_v40  ;;  %v969_v40 = vadd.f32 %v968_v25, %v967_v33  ;;  %v895_v25 = vadd.s32 80, %v1655_v20 }
 0x1f0   : > { %v740_v52 = vpop.xlane.xlu1 %739  ;;  %v1684_v54 = vpop.xlane.xlu0 %745  ;;  %vm924_vm7 = vcmp.lt.s32.totalorder %v1698_v22, 256  ;;  %v860_v22 = vld [vmem:[%s1662_s11 + $0x48] sm:$0xff] }
 0x1f1   : > { %v811_v58 = vmax.f32 %v740_v52, 1e-16  ;;  %v1349_v63 = vpop.eup %1348 }
 0x1f2   : > { %v1351_v3 = vpop.eup %1350  ;;  %v840_v16 = vmul.f32 %v1349_v63, %v792_v7  ;;  %v954_v63 = vsel %vm922_vm5, %v938_v43, 0.0 }
 0x1f3   : > { %1358 = vrsqrt.f32 %v811_v58  ;;  %v1353_v14 = vpop.eup %1352  ;;  %v793_v18 = vmul.f32 %v1351_v3, %v1644_v53  ;;  %v937_v53 = vmul.f32 %v870_v13, %v870_v13  ;;  %v971_v58 = vadd.f32 %v970_v50, %v969_v40 }
 0x1f4   : > { %1360 = vrsqrt.f32 %v810_v47  ;;  %v644_v8 = vpop.xlane.xlu1 %643  ;;  %v694_v9 = vpop.xlane.xlu0 %693  ;;  %v872_v36 = vsub.f32 %v840_v16, %v856_v21  ;;  %v765_v47 = vmax.f32 %v1652_v12, 1e-16  ;;  %v814_v12 = vmax.f32 %v1684_v54, 1e-16 }
 0x1f5   : > { %v1355_v24 = vpop.eup %1354  ;;  %v841_v31 = vmul.f32 %v1353_v14, %v793_v18  ;;  %v764_v38 = vmax.f32 %v694_v9, 1e-16  ;;  %v974_v10 = vsel %vm966_vm3, %v954_v63, 0.0  ;;  %v896_v16 = vadd.s32 88, %v1655_v20 }
 0x1f6   : > { %v794_v41 = vmul.f32 %v1355_v24, %v1650_v4  ;;  %v953_v4 = vsel %vm921_vm4, %v937_v53, 0.0  ;;  %v939_v55 = vmul.f32 %v872_v36, %v872_v36  ;;  %v1747_v40 = vadd.s32 %v1674_v37, %v895_v25 }
 0x1f7   : > { %v873_v51 = vsub.f32 %v841_v31, %v857_v34  ;;  %1362 = vrsqrt.f32 %v764_v38  ;;  %v972_v3 = vsel %vm966_vm3, %v953_v4, 0.0  ;;  %v911_v34 = vadd.s32 %v1674_v37, %v894_v23 }
 0x1f8   : > { %v742_v29 = vpop.xlane.xlu0 %741  ;;  %v1703_v30 = vpop.xlane.xlu1 %703  ;;  %v973_v13 = vadd.f32 %v972_v3, %v971_v58  ;;  %vm928_vm12 = vcmp.lt.s32.totalorder %v1747_v40, 256  ;;  %v900_v25 = vadd.s32 120, %v1655_v20 }
 0x1f9   : > { %v1357_v39 = vpop.eup %1356  ;;  %v812_v45 = vmax.f32 %v742_v29, 1e-16  ;;  %v940_v7 = vmul.f32 %v873_v51, %v873_v51  ;;  %v769_v18 = vmax.f32 %v1703_v30, 1e-16  ;;  %vm927_vm10 = vcmp.lt.s32.totalorder %v911_v34, 256 }
 0x1fa   : > { %v795_v57 = vmul.f32 %v1357_v39, %v644_v8  ;;  %v955_v8 = vsel %vm923_vm6, %v939_v55, 0.0  ;;  %v975_v21 = vadd.f32 %v974_v10, %v973_v13  ;;  %v1744_v39 = vadd.s32 %v1674_v37, %v896_v16 }
 0x1fb   : > { %1364 = vrsqrt.f32 %v812_v45  ;;  %v976_v17 = vsel %vm966_vm3, %v955_v8, 0.0  ;;  %v956_v27 = vsel %vm924_vm7, %v940_v7, 0.0  ;;  %v899_v16 = vadd.s32 112, %v1655_v20 }
 0x1fc   : > { %v700_v46 = vpop.xlane.xlu1 %699  ;;  %v1714_v48 = vpop.xlane.xlu0 %705  ;;  %1366 = vrsqrt.f32 %v765_v47  ;;  %v977_v29 = vadd.f32 %v976_v17, %v975_v21  ;;  %v978_v45 = vsel %vm966_vm3, %v956_v27, 0.0  ;;  %v898_v47 = vadd.s32 104, %v1655_v20 }
 0x1fd   : > { %v1359_v49 = vpop.eup %1358  ;;  %v767_v6 = vmax.f32 %v700_v46, 1e-16  ;;  %1368 = vrsqrt.f32 %v766_v56  ;;  %v770_v24 = vmax.f32 %v1714_v48, 1e-16  ;;  %vm929_vm11 = vcmp.lt.s32.totalorder %v1744_v39, 256 }
 0x1fe   : > { %v1361_v52 = vpop.eup %1360  ;;  %v843_v2 = vmul.f32 %v1359_v49, %v795_v57  ;;  %1370 = vrsqrt.f32 %v813_v61  ;;  %v979_v49 = vadd.f32 %v978_v45, %v977_v29  ;;  %v861_v61 = vld [vmem:[%s1662_s11 + $0x50] sm:$0xff]  ;;  %v917_v39 = vadd.s32 %v1674_v37, %v900_v25 }
 0x1ff   : > { %v842_v59 = vmul.f32 %v1361_v52, %v794_v41  ;;  %1372 = vrsqrt.f32 %v814_v12  ;;  %v897_v41 = vadd.s32 96, %v1655_v20 }
 0x200   : > { %v748_v35 = vpop.xlane.xlu1 %747  ;;  %v702_v0 = vpop.xlane.xlu0 %701  ;;  %v875_v60 = vsub.f32 %v843_v2, %v859_v5  ;;  %1374 = vrsqrt.f32 %v767_v6  ;;  %v915_v6 = vadd.s32 %v1674_v37, %v898_v47  ;;  %vm933_vm0 = vcmp.lt.s32.totalorder %v917_v39, 256 }
 0x201   : > { %v815_v9 = vmax.f32 %v748_v35, 1e-16  ;;  %v874_v11 = vsub.f32 %v842_v59, %v858_v1  ;;  %v768_v54 = vmax.f32 %v702_v0, 1e-16  ;;  %v1363_v28 = vpop.eup %1362  ;;  %v862_v59 = vld [vmem:[%s1662_s11 + $0x58] sm:$0xff]  ;;  %v914_v3 = vadd.s32 %v1674_v37, %v897_v41 }
 0x202   : > { %v942_v31 = vmul.f32 %v875_v60, %v875_v60  ;;  %vm931_vm14 = vcmp.lt.s32.totalorder %v915_v6, 256 }
 0x203   : > { %1376 = vrsqrt.f32 %v815_v9  ;;  %v941_v26 = vmul.f32 %v874_v11, %v874_v11  ;;  %vm930_vm13 = vcmp.lt.s32.totalorder %v914_v3, 256 }
 0x204   : > { %v752_v14 = vpop.xlane.xlu1 %751  ;;  %v750_v15 = vpop.xlane.xlu0 %749  ;;  %1378 = vrsqrt.f32 %v768_v54  ;;  %v958_v50 = vsel %vm926_vm9, %v942_v31, 0.0 }
 0x205   : > { %v816_v19 = vmax.f32 %v750_v15, 1e-16  ;;  %v817_v30 = vmax.f32 %v752_v14, 1e-16  ;;  %v1365_v38 = vpop.eup %1364  ;;  %v957_v43 = vsel %vm925_vm8, %v941_v26, 0.0  ;;  %v982_v62 = vsel %vm966_vm3, %v958_v50, 0.0 }
 0x206   : > { %v1367_v42 = vpop.eup %1366  ;;  %v980_v58 = vsel %vm966_vm3, %v957_v43, 0.0  ;;  %v863_v14 = vld [vmem:[%s1662_s11 + $0x60] sm:$0xff] }
 0x207   : > { %1380 = vrsqrt.f32 %v816_v19  ;;  %v1369_v48 = vpop.eup %1368  ;;  %v981_v0 = vadd.f32 %v980_v58, %v979_v49 }
 0x208   : > { %v754_v53 = vpop.xlane.xlu1 %753  ;;  %v646_v32 = vpop.xlane.xlu0 %645  ;;  %1382 = vrsqrt.f32 %v769_v18 }
 0x209   : > { %v818_v33 = vmax.f32 %v754_v53, 1e-16  ;;  %v796_v36 = vmul.f32 %v1363_v28, %v646_v32  ;;  %1384 = vrsqrt.f32 %v770_v24  ;;  %v1371_v52 = vpop.eup %1370  ;;  %v983_v13 = vadd.f32 %v982_v62, %v981_v0  ;;  %v864_v24 = vld [vmem:[%s1662_s11 + $0x68] sm:$0xff] }
 0x20a   : > { %v1373_v57 = vpop.eup %1372 }
 0x20b   : > { %1386 = vrsqrt.f32 %v818_v33  ;;  %v844_v46 = vmul.f32 %v1365_v38, %v796_v36  ;;  %v1375_v63 = vpop.eup %1374 }
 0x20c   : > { %1388 = vrsqrt.f32 %v817_v30  ;;  %v650_v51 = vpop.xlane.xlu1 %649  ;;  %v648_v4 = vpop.xlane.xlu0 %647 }
 0x20d   : > { %v876_v55 = vsub.f32 %v844_v46, %v860_v22  ;;  %v798_v44 = vmul.f32 %v1369_v48, %v650_v51  ;;  %v797_v56 = vmul.f32 %v1367_v42, %v648_v4  ;;  %v1377_v35 = vpop.eup %1376  ;;  %v865_v22 = vld [vmem:[%s1662_s11 + $0x70] sm:$0xff]  ;;  %v916_v42 = vadd.s32 %v1674_v37, %v899_v16  ;;  %v866_v48 = vld [vmem:[%s1662_s11 + $0x78] sm:$0xff] }
 0x20e   : > { %v1379_v7 = vpop.eup %1378 }
 0x20f   : > { %v943_v1 = vmul.f32 %v876_v55, %v876_v55  ;;  %v846_v12 = vmul.f32 %v1373_v57, %v798_v44  ;;  %v845_v2 = vmul.f32 %v1371_v52, %v797_v56  ;;  %vm932_vm15 = vcmp.lt.s32.totalorder %v916_v42, 256 }
 0x210   : > { %v652_v5 = vpop.xlane.xlu0 %651  ;;  %v654_v23 = vpop.xlane.xlu1 %653 }
 0x211   : > { %v959_v8 = vsel %vm927_vm10, %v943_v1, 0.0  ;;  %v878_v9 = vsub.f32 %v846_v12, %v862_v59  ;;  %v877_v10 = vsub.f32 %v845_v2, %v861_v61  ;;  %v799_v11 = vmul.f32 %v1375_v63, %v652_v5  ;;  %v1381_v54 = vpop.eup %1380 }
 0x212   : > { %v984_v60 = vsel %vm966_vm3, %v959_v8, 0.0  ;;  %v800_v15 = vmul.f32 %v1379_v7, %v654_v23  ;;  %v1383_v17 = vpop.eup %1382 }
 0x213   : > { %v945_v18 = vmul.f32 %v878_v9, %v878_v9  ;;  %v944_v19 = vmul.f32 %v877_v10, %v877_v10  ;;  %v847_v21 = vmul.f32 %v1377_v35, %v799_v11  ;;  %v1385_v26 = vpop.eup %1384  ;;  %v985_v27 = vadd.f32 %v984_v60, %v983_v13 }
 0x214   : > { %v848_v28 = vmul.f32 %v1381_v54, %v800_v15  ;;  %v656_v29 = vpop.xlane.xlu0 %655  ;;  %v658_v31 = vpop.xlane.xlu1 %657 }
 0x215   : > { %v1387_v30 = vpop.eup %1386  ;;  %v961_v53 = vsel %vm929_vm11, %v945_v18, 0.0  ;;  %v960_v32 = vsel %vm928_vm12, %v944_v19, 0.0  ;;  %v879_v33 = vsub.f32 %v847_v21, %v863_v14  ;;  %v801_v34 = vmul.f32 %v1383_v17, %v656_v29 }
 0x216   : > { %v1389_v36 = vpop.eup %1388  ;;  %v986_v20 = vsel %vm966_vm3, %v960_v32, 0.0  ;;  %v880_v38 = vsub.f32 %v848_v28, %v864_v24  ;;  %v802_v41 = vmul.f32 %v1385_v26, %v658_v31  ;;  %v988_v49 = vsel %vm966_vm3, %v961_v53, 0.0 }
 0x217   : > { %v987_v43 = vadd.f32 %v986_v20, %v985_v27  ;;  %v946_v45 = vmul.f32 %v879_v33, %v879_v33  ;;  %v849_v46 = vmul.f32 %v1389_v36, %v801_v34 }
 0x218   : > { %v947_v40 = vmul.f32 %v880_v38, %v880_v38  ;;  %v850_v50 = vmul.f32 %v1387_v30, %v802_v41 }
 0x219   : > { %v962_v51 = vsel %vm930_vm13, %v946_v45, 0.0  ;;  %v881_v4 = vsub.f32 %v849_v46, %v865_v22  ;;  %v989_v47 = vadd.f32 %v988_v49, %v987_v43 }
 0x21a   : > { %v990_v52 = vsel %vm966_vm3, %v962_v51, 0.0  ;;  %v963_v55 = vsel %vm931_vm14, %v947_v40, 0.0  ;;  %v882_v44 = vsub.f32 %v850_v50, %v866_v48 }
 0x21b   : > { %v948_v56 = vmul.f32 %v881_v4, %v881_v4  ;;  %v991_v57 = vadd.f32 %v990_v52, %v989_v47  ;;  %v992_v37 = vsel %vm966_vm3, %v963_v55, 0.0 }
 0x21c   : > { %v949_v58 = vmul.f32 %v882_v44, %v882_v44 }
 0x21d   : > { %v964_v59 = vsel %vm932_vm15, %v948_v56, 0.0  ;;  %v993_v61 = vadd.f32 %v992_v37, %v991_v57 }
 0x21e   : > { %v965_v63 = vsel %vm933_vm0, %v949_v58, 0.0  ;;  %v994_v62 = vsel %vm966_vm3, %v964_v59, 0.0 }
 0x21f   : > { %v995_v1 = vadd.f32 %v994_v62, %v993_v61  ;;  %v996_v12 = vsel %vm966_vm3, %v965_v63, 0.0 }
 0x221   : > { %v997_v2 = vadd.f32 %v996_v12, %v995_v1 }
 0x223   : > { %998 = vadd.xlane.f32.xlu0 %v997_v2 }
 0x2b0   : > { %v999_v35 = vpop.xlane.xlu0 %998 }
 0x2b1   : > { %v1000_v0 = vrot.slane %v999_v35, 4 }
 0x2b3   : > { %v1001_v3 = vadd.f32 %v1000_v0, %v999_v35 }
 0x2b5   : > { %v1002_v5 = vrot.slane %v1001_v3, 2 }
 0x2b7   : > { %v1003_v6 = vadd.f32 %v1002_v5, %v1001_v3 }
 0x2b9   : > { %v1004_v23 = vrot.slane %v1003_v6, 1 }
 0x2bb   : > { %v1005_v7 = vadd.f32 %v1004_v23, %v1003_v6 }
 0x2bd   : > { %1248 = vpush %v1005_v7 }
 0x2ee   : > { %s1249_s23 = spop %1248 }
 0x2ef   : > { %v1007_v8 = vstv %s1249_s23 }
 0x2f0   : > { %1008 = vst [vmem:[%s238_s20] sm:$0xff] %v1007_v8 }
 0x2f1   : > { %1431 = shalt.err (!%p1428_p7)
}
 0x2f2   : > { %s1432_s19 = scalar_lea.hbm %s1794_s29, 128  ;;  %s1436_s11 = scalar_lea.hbm %s1838_s4, 256 }
 0x2f3   : > { %p1433_p8 = scmp.ne.s32.totalorder %s1794_s29, %s1432_s19  ;;  %p1437_p1 = scmp.lt.u32.totalorder %s1794_s29, %s1838_s4 }
 0x2f4   : > { %p1438_p0 = scmp.lt.u32.totalorder %s1436_s11, %s1432_s19  ;;  %p1440_p6 = scmp.lt.u32.totalorder %s1432_s19, %s1794_s29 }
 0x2f5   : > { %p1434_p11 = pnand %p1433_p8, %p1849_p9 }
 0x2f6   : > { %p1439_p5 = por %p1438_p0, %p1437_p1 }
 0x2f7   : > { %p1435_p13 = pneg %p1434_p11 }
 0x2f8   : > { %p1441_p10 = por %p1440_p6, %p1439_p5 }
 0x2fa   : > { %p1442_p12 = pnand %p1441_p10, %p1435_p13 }
 0x2fc   : > { %1445 = shalt.err (!%p1442_p12)
}
 0x2fd   : > { %1254 = dma.vmem_to_hbm [thread:$0]  (%p1849_p9), %s1787_s22, 128, %s1794_s29, %s1010_s30  }
 0x2fe PF: > { %p1266_p2 = scmp.ge.s32.totalorder %s1484_s18, 2  ;;  %s1035_s14 = sand.u32 1, %s1472_s15  }
 0x2ff   : > { %p1850_p3 = scmp.ne.s32.totalorder %s1843_s26, 0  ;;  %s1036_s20 = scalar_lea.sflag [#allocation4], %s1035_s14 }
 0x301   : > { %p1261_p4 = pnand %p1266_p2, %p1850_p3 }
 0x303   : > { %1467 = dma.done.wait (!%p1261_p4), %s1036_s20, 128  }
 0x304   : > { %1469 = vsyncadd (!%p1261_p4), %s1036_s20, 4294967168  ;;  %p15_p7 = scmp.ge.s32.totalorder %s1540_s21, 4   ;;  %s1851_s15 = smov %s1476_s16 }
 0x305   : > { %s1852_s16 = smov %s1480_s17  ;;  %s1853_s17 = smov %s1551_s24 }
 0x306   : > { %s1854_s18 = smov %s1540_s21  ;;  %17 = sbr.rel (!%p15_p7) target bundleno = 4 (0x4), region = 82 }
 0x30d   :  { %1041 = vsyncpa [#allocation3], 1 }
 0x30e   :  { %1043 = vsyncpa [#allocation3 + $0x1], 1 }
 0x30f   :  { %1044 = vsyncpa [#allocation4], 1 }
 0x310   :  { %1046 = vsyncpa [#allocation4 + $0x1], 1 }

</bundles_post_ra>
